<compile_context>
chip_gen: v6e
topology: v6e:2x2x1
jax: 0.10.0
libtpu: 0.0.40
codegen_flags: <defaults>
</compile_context>

<pallas_src>
import functools

import jax
import jax.numpy as jnp
from jax.experimental import pallas as pl
from jax.experimental.pallas import tpu as pltpu

_SUBLANE = 8


# ----------------------------------------------------------------------------
# Kernels
# ----------------------------------------------------------------------------
def _gelu_tanh(h, dtype):
    """GELU, tanh approximation (matches nn.GELU(approximate='tanh'))."""
    h = h.astype(dtype)
    one = jnp.asarray(1.0, dtype)
    c0 = jnp.asarray(0.7978845608028654, dtype)  # sqrt(2/pi)
    c1 = jnp.asarray(0.044715, dtype)
    inner = h * (one + c1 * (h * h))             # h + 0.044715*h^3
    return jnp.asarray(0.5, dtype) * h * (one + jnp.tanh(c0 * inner))


def _mlp_kernel_resident(x_ref, wfc_ref, bfc_ref, wpr_ref, bpr_ref, o_ref, *,
                         compute_dtype):
    # Resident-weight path: whole hidden dim in one shot; no accumulator
    # scratch, no zero-fill, o_ref written directly.
    h = jnp.dot(x_ref[...], wfc_ref[...], preferred_element_type=jnp.float32)
    h = h + bfc_ref[...].astype(jnp.float32)
    g = _gelu_tanh(h, compute_dtype)
    out = jnp.dot(g.astype(wpr_ref.dtype), wpr_ref[...],
                  preferred_element_type=jnp.float32)
    o_ref[...] = (out + bpr_ref[...].astype(jnp.float32)).astype(o_ref.dtype)


def _mlp_kernel_streamed(x_ref, wfc_ref, bfc_ref, wpr_ref, bpr_ref, o_ref,
                         acc_ref, *, hidden, th, compute_dtype):
    # Streamed-weight path: reduce over hidden tiles j into an f32 VMEM acc.
    j = pl.program_id(1)
    ragged = hidden % th != 0

    h = jnp.dot(x_ref[...], wfc_ref[...], preferred_element_type=jnp.float32)
    h = h + bfc_ref[...].astype(jnp.float32)
    g = _gelu_tanh(h, compute_dtype)

    wpr = wpr_ref[...]
    if ragged:
        # Zero BOTH sides of the padded tail of the last hidden tile: the
        # out-of-bounds pad is undefined, and 0 * inf would give NaN if only
        # one side were masked.
        col = jax.lax.broadcasted_iota(jnp.int32, (1, th), 1) + j * th
        g = jnp.where(col < hidden, g, jnp.zeros_like(g))
        row = jax.lax.broadcasted_iota(jnp.int32, (th, 1), 0) + j * th
        wpr = jnp.where(row < hidden, wpr, jnp.zeros_like(wpr))

    part = jnp.dot(g.astype(wpr.dtype), wpr, preferred_element_type=jnp.float32)

    @pl.when(j == 0)
    def _():
        acc_ref[...] = part            # assign (no zero-init + reload)

    @pl.when(j > 0)
    def _():
        acc_ref[...] += part

    @pl.when(j == pl.num_programs(1) - 1)
    def _():
        o_ref[...] = (acc_ref[...] + bpr_ref[...].astype(jnp.float32)
                      ).astype(o_ref.dtype)


# ----------------------------------------------------------------------------
# Tile / budget selection (host-side, static)
# ----------------------------------------------------------------------------
@functools.lru_cache(maxsize=None)
def _vmem_budget():
    """(planning budget, compiler vmem limit) from the device's VMEM capacity."""
    try:
        cap = int(pltpu.get_tpu_info().vmem_capacity_bytes)
    except Exception:
        cap = 64 * 1024 * 1024         # conservative default (v7x per-core)
    cap = max(cap, 32 * 1024 * 1024)
    target = int(cap * 0.70)
    limit = min(int(cap * 0.85), 112 * 1024 * 1024)
    return target, limit


@functools.lru_cache(maxsize=None)
def _single_buffer_supported():
    """Probe whether pipeline_mode=pl.Buffered(1) is accepted by this jax."""
    try:
        fn = pl.pallas_call(
            lambda x_ref, o_ref: o_ref.__setitem__(..., x_ref[...]),
            out_shape=jax.ShapeDtypeStruct((8, 128), jnp.float32),
            grid=(2,),
            in_specs=[pl.BlockSpec((8, 128), lambda i: (0, 0),
                                   pipeline_mode=pl.Buffered(1))],
            out_specs=pl.BlockSpec((8, 128), lambda i: (0, 0)),
        )
        jax.block_until_ready(fn(jnp.zeros((8, 128), jnp.float32)))
        return True
    except Exception:
        return False


def _row_tile(M, tm_pref):
    # Multiple of 8, and small enough that the M grid has >= 2 steps whenever
    # M allows it, so dimension_semantics=("parallel",...) keeps both v7x
    # TensorCores busy even for small-batch shapes.
    if M <= _SUBLANE:
        return M
    half = _SUBLANE * pl.cdiv(pl.cdiv(M, 2), _SUBLANE)
    return max(_SUBLANE, min(tm_pref, half, M))


def _vmem_estimate(C, th, tm, w_bytes, a_bytes, g_bytes, resident, single_buf_w):
    w_tile = (2 * C * th + th + C) * w_bytes
    w_bufs = 1 if (resident and single_buf_w) else 2   # resident -> single buffer
    xo = 2 * 2 * tm * C * a_bytes                      # x + out tiles, double-buffered
    inter = tm * th * (4 + g_bytes)                    # f32 h + GELU-dtype g
    acc = 0 if resident else tm * C * 4                # f32 accumulator (streamed only)
    return w_bufs * w_tile + xo + inter + acc


def _pick_th(C, H, tm, w_bytes, a_bytes, g_bytes, budget, single_buf_w):
    def fits(t):
        return _vmem_estimate(C, t, tm, w_bytes, a_bytes, g_bytes, False,
                              single_buf_w) <= budget
    cands = []
    for t in range(256 * (H // 256), 0, -256):          # 256-multiples dividing H
        if t < H and H % t == 0:
            cands.append(t)
    for t in range(128 * (H // 128), 0, -128):          # then 128-multiples dividing H
        if t < H and H % t == 0 and t not in cands:
            cands.append(t)
    for t in range(256 * ((H - 1) // 256), 0, -256):    # ragged (masked) 256-multiples
        if t not in cands:
            cands.append(t)
    for t in cands:
        if fits(t):
            return t
    return None


def _choose_tiles(M, C, H, w_bytes, a_bytes, g_bytes, budget, tm_arg, th_arg,
                  single_buf_w):
    # Explicit th override decides resident vs streamed directly (for tests).
    if th_arg is not None:
        th = min(th_arg, H)
        resident = th >= H
        if tm_arg is not None:
            tm = min(tm_arg, M)
        else:
            tm = _row_tile(M, 512 if resident else (1024 if a_bytes == 2 else 512))
        return tm, (H if resident else th), resident

    # 1) Prefer resident weights: DMA'd once, reused by every row tile.
    tm_res = min(tm_arg, M) if tm_arg is not None else _row_tile(M, 512)
    if _vmem_estimate(C, H, tm_res, w_bytes, a_bytes, g_bytes, True,
                      single_buf_w) <= budget:
        return tm_res, H, True

    # 2) Streamed weights: bigger row tile so the weight stream hides under
    #    the MXU, then the largest hidden tile that fits the budget.
    tm = min(tm_arg, M) if tm_arg is not None else _row_tile(M, 1024 if a_bytes == 2 else 512)
    while True:
        th = _pick_th(C, H, tm, w_bytes, a_bytes, g_bytes, budget, single_buf_w)
        if th is not None:
            return tm, th, False
        if tm <= 64 or tm_arg is not None:
            th = min(256, H)           # last resort; vmem_limit headroom absorbs it
            return tm, th, th >= H
        tm = max(64, tm // 2)


# ----------------------------------------------------------------------------
# pallas_call wrapper
# ----------------------------------------------------------------------------
@functools.partial(jax.jit, static_argnames=(
    "tm", "th", "resident", "single_buffer_weights", "vmem_limit"))
def _mlp_pallas_call(x, w_fc, b_fc, w_proj, b_proj, *, tm, th, resident,
                     single_buffer_weights, vmem_limit):
    B, T, C = x.shape
    H = w_fc.shape[1]
    M = B * T

    x2 = x.reshape(M, C)
    bfc2 = b_fc.reshape(1, H)
    bpr2 = b_proj.reshape(1, C)
    compute_dtype = jnp.bfloat16 if w_proj.dtype == jnp.bfloat16 else jnp.float32

    nm = pl.cdiv(M, tm)
    nh = 1 if resident else pl.cdiv(H, th)

    # Advisory cost model: streamed weights are re-read once per row tile.
    w_bytes = jnp.dtype(w_fc.dtype).itemsize
    a_bytes = jnp.dtype(x.dtype).itemsize
    weight_bytes = ((w_fc.size + w_proj.size) * w_bytes
                    + (b_fc.size + b_proj.size) * jnp.dtype(b_fc.dtype).itemsize)
    if not resident:
        weight_bytes *= nm
    cost = pl.CostEstimate(flops=4 * M * C * H, transcendentals=M * H,
                           bytes_accessed=2 * M * C * a_bytes + weight_bytes)

    w_mode = {"pipeline_mode": pl.Buffered(1)} if single_buffer_weights else {}

    if resident:
        kernel = functools.partial(_mlp_kernel_resident, compute_dtype=compute_dtype)
        grid_spec = pltpu.PrefetchScalarGridSpec(
            num_scalar_prefetch=0,
            grid=(nm,),
            in_specs=[
                pl.BlockSpec((tm, C), lambda i: (i, 0)),            # x row tile
                pl.BlockSpec((C, H), lambda i: (0, 0), **w_mode),   # c_fc weight (resident)
                pl.BlockSpec((1, H), lambda i: (0, 0), **w_mode),   # c_fc bias
                pl.BlockSpec((H, C), lambda i: (0, 0), **w_mode),   # c_proj weight
                pl.BlockSpec((1, C), lambda i: (0, 0), **w_mode),   # c_proj bias
            ],
            out_specs=pl.BlockSpec((tm, C), lambda i: (i, 0)),
        )
        dims = ("parallel",)
    else:
        kernel = functools.partial(_mlp_kernel_streamed, hidden=H, th=th,
                                   compute_dtype=compute_dtype)
        grid_spec = pltpu.PrefetchScalarGridSpec(
            num_scalar_prefetch=0,
            grid=(nm, nh),
            in_specs=[
                pl.BlockSpec((tm, C), lambda i, j: (i, 0)),   # x row tile
                pl.BlockSpec((C, th), lambda i, j: (0, j)),   # c_fc weight tile
                pl.BlockSpec((1, th), lambda i, j: (0, j)),   # c_fc bias tile
                pl.BlockSpec((th, C), lambda i, j: (j, 0)),   # c_proj weight tile
                pl.BlockSpec((1, C), lambda i, j: (0, 0)),    # c_proj bias
            ],
            out_specs=pl.BlockSpec((tm, C), lambda i, j: (i, 0)),
            scratch_shapes=[pltpu.VMEM((tm, C), jnp.float32)],
        )
        dims = ("parallel", "arbitrary")

    out = pl.pallas_call(
        kernel,
        out_shape=jax.ShapeDtypeStruct((M, C), x.dtype),
        grid_spec=grid_spec,
        compiler_params=pltpu.CompilerParams(
            dimension_semantics=dims,
            vmem_limit_bytes=vmem_limit),
        cost_estimate=cost,
    )(x2, w_fc, bfc2, w_proj, bpr2)

    return out.reshape(B, T, C)


def mlp_pallas(x, w_fc, b_fc, w_proj, b_proj, *, tm=None, th=None):
    """x: [B, T, C]; w_fc: [C, 4C]; b_fc: [4C]; w_proj: [4C, C]; b_proj: [C].

    Weights are (in_features, out_features), i.e. transposed vs torch.nn.Linear.
    """
    B, T, C = x.shape
    H = w_fc.shape[1]
    M = B * T

    budget, limit = _vmem_budget()
    single_buf_w = _single_buffer_supported()
    compute_dtype = jnp.bfloat16 if w_proj.dtype == jnp.bfloat16 else jnp.float32

    tm_sel, th_sel, resident = _choose_tiles(
        M, C, H,
        w_bytes=jnp.dtype(w_fc.dtype).itemsize,
        a_bytes=jnp.dtype(x.dtype).itemsize,
        g_bytes=jnp.dtype(compute_dtype).itemsize,
        budget=budget, tm_arg=tm, th_arg=th, single_buf_w=single_buf_w)

    return _mlp_pallas_call(
        x, w_fc, b_fc, w_proj, b_proj,
        tm=int(tm_sel), th=int(th_sel), resident=bool(resident),
        single_buffer_weights=bool(single_buf_w and resident),
        vmem_limit=int(limit))


# ----------------------------------------------------------------------------
# Reference + tests
# ----------------------------------------------------------------------------
def mlp_reference(x, w_fc, b_fc, w_proj, b_proj):
    hp = jax.lax.Precision.HIGHEST
    h = jnp.einsum("btc,ch->bth", x, w_fc, precision=hp) + b_fc
    g = jax.nn.gelu(h, approximate=True)
    return jnp.einsum("bth,hc->btc", g, w_proj, precision=hp) + b_proj


def _make_inputs(C, H, B, T, dtype, key):
    kx, kw1, kb1, kw2, kb2 = jax.random.split(key, 5)
    x = jax.random.normal(kx, (B, T, C), dtype=jnp.float32).astype(dtype)
    w_fc = (jax.random.normal(kw1, (C, H), dtype=jnp.float32) * 0.02).astype(dtype)
    b_fc = (jax.random.normal(kb1, (H,), dtype=jnp.float32) * 0.02).astype(dtype)
    w_proj = (jax.random.normal(kw2, (H, C), dtype=jnp.float32) * 0.02).astype(dtype)
    b_proj = (jax.random.normal(kb2, (C,), dtype=jnp.float32) * 0.02).astype(dtype)
    return x, w_fc, b_fc, w_proj, b_proj


if __name__ == "__main__":
    # 1) Small GPT-2-like config (n_embd=32 -> hidden 128), f32, auto path:
    #    resident weights, nm >= 2 row tiles.
    args = _make_inputs(32, 128, 2, 8, jnp.float32, jax.random.PRNGKey(0))
    y = mlp_pallas(*args)
    jax.block_until_ready(y)
    assert y.shape == (2, 8, 32)
    assert jnp.allclose(y, mlp_reference(*args), atol=1e-4, rtol=1e-4), \
        "f32 resident path mismatch"

    # 2) Forced streamed hidden axis with an evenly dividing tile (2x4 grid).
    args2 = _make_inputs(128, 512, 4, 16, jnp.float32, jax.random.PRNGKey(1))
    y2 = mlp_pallas(*args2, tm=16, th=128)
    jax.block_until_ready(y2)
    assert jnp.allclose(y2, mlp_reference(*args2), atol=1e-4, rtol=1e-4), \
        "f32 streamed path mismatch"

    # 3) Forced streamed hidden axis with a ragged (masked) last tile: H=640, th=256.
    args3 = _make_inputs(160, 640, 2, 16, jnp.float32, jax.random.PRNGKey(2))
    y3 = mlp_pallas(*args3, tm=16, th=256)
    jax.block_until_ready(y3)
    assert jnp.allclose(y3, mlp_reference(*args3), atol=1e-4, rtol=1e-4), \
        "f32 ragged streamed path mismatch"

    # 4) bf16 operands straight to the MXU, bf16 GELU tail, f32 accumulation.
    args4 = _make_inputs(128, 512, 2, 32, jnp.bfloat16, jax.random.PRNGKey(3))
    y4 = mlp_pallas(*args4)
    jax.block_until_ready(y4)
    y4_ref = mlp_reference(*[a.astype(jnp.float32) for a in args4])
    assert jnp.allclose(y4.astype(jnp.float32), y4_ref, atol=5e-2, rtol=5e-2), \
        "bf16 path mismatch"

    print("KERNEL_OK")
</pallas_src>

<mosaic_0001>
module attributes {stable_mosaic.version = 11 : i64} {
  func.func @_lambda_(%arg0: i32, %arg1: memref<8x128xf32, #tpu.memory_space<vmem>>, %arg2: memref<8x128xf32, #tpu.memory_space<vmem>>) attributes {dimension_semantics = [#tpu.dimension_semantics<arbitrary>], iteration_bounds = array<i64: 2>, scalar_prefetch = 0 : i64, scratch_operands = 0 : i64, tpu.core_type = #tpu.core_type<tc>, window_params = [{pipeline_mode = #tpu.pipeline_mode<synchronous>, transform_indices = @transform_0, window_bounds = array<i64: 8, 128>}, {pipeline_mode = #tpu.pipeline_mode<synchronous>, transform_indices = @transform_1, window_bounds = array<i64: 8, 128>}]} {
    %c0 = arith.constant 0 : index
    %c0_0 = arith.constant 0 : index
    %0 = vector.load %arg1[%c0, %c0_0] : memref<8x128xf32, #tpu.memory_space<vmem>>, vector<8x128xf32>
    %c0_1 = arith.constant 0 : index
    %c0_2 = arith.constant 0 : index
    %1 = vector.load %arg2[%c0_1, %c0_2] : memref<8x128xf32, #tpu.memory_space<vmem>>, vector<8x128xf32>
    tpu.vector_store %arg2[%c0_1, %c0_2], %0 {strides = array<i32>} : memref<8x128xf32, #tpu.memory_space<vmem>>, vector<8x128xf32>,
    return
  }
  func.func @transform_0(%arg0: i32) -> (i32, i32) {
    %c0_i32 = arith.constant 0 : i32
    %c0_i32_0 = arith.constant 0 : i32
    %c0_i32_1 = arith.constant 0 : i32
    return %c0_i32, %c0_i32_0 : i32, i32
  }
  func.func @transform_1(%arg0: i32) -> (i32, i32) {
    %c0_i32 = arith.constant 0 : i32
    %c0_i32_0 = arith.constant 0 : i32
    %c0_i32_1 = arith.constant 0 : i32
    return %c0_i32, %c0_i32_0 : i32, i32
  }
}

module attributes {stable_mosaic.version = 11 : i64} {
  func.func @_mlp_kernel_resident(%arg0: i32, %arg1: memref<8x32xf32, #tpu.memory_space<vmem>>, %arg2: memref<32x128xf32, #tpu.memory_space<vmem>>, %arg3: memref<1x128xf32, #tpu.memory_space<vmem>>, %arg4: memref<128x32xf32, #tpu.memory_space<vmem>>, %arg5: memref<1x32xf32, #tpu.memory_space<vmem>>, %arg6: memref<8x32xf32, #tpu.memory_space<vmem>>) attributes {dimension_semantics = [#tpu.dimension_semantics<parallel>], iteration_bounds = array<i64: 2>, scalar_prefetch = 0 : i64, scratch_operands = 0 : i64, tpu.core_type = #tpu.core_type<tc>, window_params = [{transform_indices = @transform_0, window_bounds = array<i64: 8, 32>}, {pipeline_mode = #tpu.pipeline_mode<synchronous>, transform_indices = @transform_1, window_bounds = array<i64: 32, 128>}, {pipeline_mode = #tpu.pipeline_mode<synchronous>, transform_indices = @transform_2, window_bounds = array<i64: 1, 128>}, {pipeline_mode = #tpu.pipeline_mode<synchronous>, transform_indices = @transform_3, window_bounds = array<i64: 128, 32>}, {pipeline_mode = #tpu.pipeline_mode<synchronous>, transform_indices = @transform_4, window_bounds = array<i64: 1, 32>}, {transform_indices = @transform_5, window_bounds = array<i64: 8, 32>}]} {
    %c0 = arith.constant 0 : index
    %c0_0 = arith.constant 0 : index
    %0 = vector.load %arg1[%c0, %c0_0] : memref<8x32xf32, #tpu.memory_space<vmem>>, vector<8x32xf32>
    %c0_1 = arith.constant 0 : index
    %c0_2 = arith.constant 0 : index
    %1 = vector.load %arg2[%c0_1, %c0_2] : memref<32x128xf32, #tpu.memory_space<vmem>>, vector<32x128xf32>
    %cst = arith.constant dense<0.000000e+00> : vector<8x128xf32>
    %2 = tpu.matmul %0, %1, %cst {dimension_numbers = #tpu.dot_dimension_numbers<[1], [0], [0], [1], [0, 0, 1, 1], [], []>} : vector<8x32xf32>, vector<32x128xf32>, vector<8x128xf32> -> vector<8x128xf32>
    %c0_3 = arith.constant 0 : index
    %c0_4 = arith.constant 0 : index
    %3 = vector.load %arg3[%c0_3, %c0_4] : memref<1x128xf32, #tpu.memory_space<vmem>>, vector<1x128xf32>
    %4 = vector.broadcast %3 : vector<1x128xf32> to vector<8x128xf32>
    %5 = arith.addf %2, %4 : vector<8x128xf32>
    %6 = arith.mulf %5, %5 : vector<8x128xf32>
    %cst_5 = arith.constant 4.471500e-02 : f32
    %7 = vector.broadcast %cst_5 : f32 to vector<8x128xf32>
    %8 = arith.mulf %7, %6 : vector<8x128xf32>
    %cst_6 = arith.constant 1.000000e+00 : f32
    %9 = vector.broadcast %cst_6 : f32 to vector<8x128xf32>
    %10 = arith.addf %9, %8 : vector<8x128xf32>
    %11 = arith.mulf %5, %10 : vector<8x128xf32>
    %cst_7 = arith.constant 5.000000e-01 : f32
    %12 = vector.broadcast %cst_7 : f32 to vector<8x128xf32>
    %13 = arith.mulf %12, %5 : vector<8x128xf32>
    %cst_8 = arith.constant 0.797884583 : f32
    %14 = vector.broadcast %cst_8 : f32 to vector<8x128xf32>
    %15 = arith.mulf %14, %11 : vector<8x128xf32>
    %16 = math.tanh %15 : vector<8x128xf32>
    %cst_9 = arith.constant 1.000000e+00 : f32
    %17 = vector.broadcast %cst_9 : f32 to vector<8x128xf32>
    %18 = arith.addf %17, %16 : vector<8x128xf32>
    %19 = arith.mulf %13, %18 : vector<8x128xf32>
    %c0_10 = arith.constant 0 : index
    %c0_11 = arith.constant 0 : index
    %20 = vector.load %arg4[%c0_10, %c0_11] : memref<128x32xf32, #tpu.memory_space<vmem>>, vector<128x32xf32>
    %cst_12 = arith.constant dense<0.000000e+00> : vector<8x32xf32>
    %21 = tpu.matmul %19, %20, %cst_12 {dimension_numbers = #tpu.dot_dimension_numbers<[1], [0], [0], [1], [0, 0, 1, 1], [], []>} : vector<8x128xf32>, vector<128x32xf32>, vector<8x32xf32> -> vector<8x32xf32>
    %c0_13 = arith.constant 0 : index
    %c0_14 = arith.constant 0 : index
    %22 = vector.load %arg5[%c0_13, %c0_14] : memref<1x32xf32, #tpu.memory_space<vmem>>, vector<1x32xf32>
    %23 = vector.broadcast %22 : vector<1x32xf32> to vector<8x32xf32>
    %24 = arith.addf %21, %23 : vector<8x32xf32>
    %c0_15 = arith.constant 0 : index
    %c0_16 = arith.constant 0 : index
    %25 = vector.load %arg6[%c0_15, %c0_16] : memref<8x32xf32, #tpu.memory_space<vmem>>, vector<8x32xf32>
    tpu.vector_store %arg6[%c0_15, %c0_16], %24 {strides = array<i32>} : memref<8x32xf32, #tpu.memory_space<vmem>>, vector<8x32xf32>,
    return
  }
  func.func @transform_0(%arg0: i32) -> (i32, i32) {
    %c0_i32 = arith.constant 0 : i32
    %c0_i32_0 = arith.constant 0 : i32
    return %arg0, %c0_i32 : i32, i32
  }
  func.func @transform_1(%arg0: i32) -> (i32, i32) {
    %c0_i32 = arith.constant 0 : i32
    %c0_i32_0 = arith.constant 0 : i32
    %c0_i32_1 = arith.constant 0 : i32
    return %c0_i32, %c0_i32_0 : i32, i32
  }
  func.func @transform_2(%arg0: i32) -> (i32, i32) {
    %c0_i32 = arith.constant 0 : i32
    %c0_i32_0 = arith.constant 0 : i32
    %c0_i32_1 = arith.constant 0 : i32
    return %c0_i32, %c0_i32_0 : i32, i32
  }
  func.func @transform_3(%arg0: i32) -> (i32, i32) {
    %c0_i32 = arith.constant 0 : i32
    %c0_i32_0 = arith.constant 0 : i32
    %c0_i32_1 = arith.constant 0 : i32
    return %c0_i32, %c0_i32_0 : i32, i32
  }
  func.func @transform_4(%arg0: i32) -> (i32, i32) {
    %c0_i32 = arith.constant 0 : i32
    %c0_i32_0 = arith.constant 0 : i32
    %c0_i32_1 = arith.constant 0 : i32
    return %c0_i32, %c0_i32_0 : i32, i32
  }
  func.func @transform_5(%arg0: i32) -> (i32, i32) {
    %c0_i32 = arith.constant 0 : i32
    %c0_i32_0 = arith.constant 0 : i32
    return %arg0, %c0_i32 : i32, i32
  }
}

</mosaic_0001>

<bundles_post_ra>
// kernel: tpu_custom_call.1
= control target key start
LH: loop header
LB: loop body
LE: loop exit
PB: predicated region body
PF: predicated region fallthrough
CT: control target
= control target key end

     0   :  { %6 = vsyncpa [#allocation3], 0  ;;  %s304_s0 = inlined_call_operand.hbm [shape: f32[8,128], index: 0, kind: input, shape index: {}]   ;;  %s305_s1 = inlined_call_operand.hbm [shape: f32[8,128], index: 1, kind: output, shape index: {}]  }
   0x1   :  { %7 = vsyncpa [#allocation4], 0  ;;  %s257_s6 = smov 0  }
   0x2 LB: > { %s144_s7 = sadd.s32 4294967295, %s243_s6   ;;  %p145_p0 = scmp.ge.s32.totalorder %s243_s6, 1  ;;  %s243_s6 = sphi %s257_s6, %s13_s6  }
   0x3   : > { %p60_p1 = scmp.lt.s32.totalorder %s243_s6, 3  ;;  %p269_p3 = scmp.eq.s32.totalorder %s144_s7, 0 }
   0x4   : > { %s245_s10 = smov [#allocation2]  }
   0x5   : > { %p265_p2 = pnand %p145_p0, %p60_p1  ;;  %s73_s11 = sshll.u32 %s245_s10, 4  ;;  %s74_s11 = int_to_ptr.vmem [resolvable:$true] %s73_s11 }
   0x6   : > { %s190_s12 = scalar_lea.vmem %s74_s11, 128  ;;  %p198_p10 = scmp.lt.s32.totalorder %s74_s11, %s74_s11 }
   0x7   : > { %p161_p4 = pneg %p265_p2  ;;  %p191_p7 = scmp.ne.s32.totalorder %s74_s11, %s190_s12 }
   0x8   : > { %p199_p11 = scmp.lt.s32.totalorder %s190_s12, %s190_s12 }
   0x9   : > { %p162_p5 = pnand %p269_p3, %p161_p4 }
   0xa   : > { %p200_p12 = por %p199_p11, %p198_p10 }
   0xb   : > { %p181_p6 = pneg %p162_p5 }
   0xd   : > { %p193_p8 = pnand %p191_p7, %p181_p6 }
   0xf   : > { %p194_p9 = pneg %p193_p8 }
  0x11   : > { %p201_p13 = pnand %p200_p12, %p194_p9 }
  0x13   : > { %204 = shalt.err (!%p201_p13)
}
  0x14   : > { %164 = dma.hbm_to_vmem [thread:$0]  (!%p162_p5), %s304_s0, 128, %s74_s11, [#allocation3]  }
  0x15   : > { %86 = sbr.rel (%p265_p2) target bundleno = 42 (0x2a), region = 24 }
  0x1a   : > { %234 = dma.done.wait (%p269_p3), [#allocation3], 128  }
  0x1b   : > { %236 = vsyncadd (%p269_p3), [#allocation3], 4294967168  ;;  %s246_s15 = smov [#allocation5]   ;;  %p286_p0 = scmp.eq.s32.totalorder %s144_s7, 1  ;;  %v96_v0 = vld [vmem:[#allocation2] sm:$0xff] }
  0x1c   : > { %s105_s16 = sshll.u32 %s246_s15, 4  ;;  %97 = vst [vmem:[#allocation5] sm:$0xff] %v96_v0  ;;  %s106_s16 = int_to_ptr.vmem [resolvable:$true] %s105_s16 }
  0x1d   : > { %s205_s18 = scalar_lea.vmem %s106_s16, 128  ;;  %p212_p5 = scmp.lt.s32.totalorder %s106_s16, %s106_s16 }
  0x1e   : > { %p206_p1 = scmp.ne.s32.totalorder %s106_s16, %s205_s18  ;;  %p213_p6 = scmp.lt.s32.totalorder %s205_s18, %s205_s18 }
  0x20   : > { %p207_p2 = pnand %p206_p1, %p286_p0  ;;  %p214_p7 = por %p213_p6, %p212_p5 }
  0x22   : > { %p208_p4 = pneg %p207_p2 }
  0x24   : > { %p215_p8 = pnand %p214_p7, %p208_p4 }
  0x26   : > { %218 = shalt.err (!%p215_p8)
}
  0x27   : > { %158 = dma.vmem_to_hbm [thread:$0]  (%p286_p0), %s106_s16, 128, %s305_s1, [#allocation4]  }
  0x28   : > { %238 = dma.done.wait (%p286_p0), [#allocation4], 128  }
  0x29   : > { %240 = vsyncadd (%p286_p0), [#allocation4], 4294967168 }
  0x2a PF: > { %s13_s6 = sadd.s32 1, %s243_s6  }
  0x2b   : > { %p10_p3 = scmp.ge.s32.totalorder %s13_s6, 4  }
  0x2d   :  { %12 = sbr.rel (!%p10_p3) target bundleno = 2 (0x2), region = 53 }
  0x32   :  { %118 = vsyncpa [#allocation3], 1 }
  0x33   :  { %120 = vsyncpa [#allocation3 + $0x1], 1 }
  0x34   :  { %121 = vsyncpa [#allocation4], 1 }
  0x35   :  { %123 = vsyncpa [#allocation4 + $0x1], 1 }

// kernel: _mlp_pallas_call.1
= control target key start
LH: loop header
LB: loop body
LE: loop exit
PB: predicated region body
PF: predicated region fallthrough
CT: control target
= control target key end

     0   :  { %10 = vsyncpa [#allocation3], 0  ;;  %s884_s0 = inlined_call_operand.vmem [shape: f32[16,32], index: 0, kind: input, shape index: {}]   ;;  %s885_s1 = inlined_call_operand.vmem [shape: f32[32,128], index: 1, kind: input, shape index: {}]   ;;  %s886_s2 = inlined_call_operand.vmem [shape: f32[1,128], index: 2, kind: input, shape index: {}]   ;;  %s887_s3 = inlined_call_operand.vmem [shape: f32[128,32], index: 3, kind: input, shape index: {}]   ;;  %s888_s4 = inlined_call_operand.vmem [shape: f32[1,32], index: 4, kind: input, shape index: {}]   ;;  %s889_s5 = inlined_call_operand.hbm [shape: f32[16,32], index: 5, kind: output, shape index: {}]  }
   0x1   :  { %12 = vsyncpa [#allocation3 + $0x1], 0  ;;  %s701_s18 = smov 0   ;;  %s703_s19 = smov 0  }
   0x2   :  { %s705_s20 = smov 0   ;;  %s707_s21 = smov 0  }
   0x3 LB: > { %s722_s22 = sadd.s32 4294967295, %s666_s21   ;;  %s482_s23 = sadd.s32 4294967294, %s666_s21   ;;  %s666_s21 = sphi %s707_s21, %s895_s21   ;;  %s662_s20 = sphi %s705_s20, %s894_s20   ;;  %s658_s19 = sphi %s703_s19, %s893_s19   ;;  %s654_s18 = sphi %s701_s18, %s892_s18  }
   0x4   : > { %s726_s24 = sadd.s32 1, %s666_s21   ;;  %s135_s25 = sadd.s32 1, %s662_s20 }
   0x5   : > { %s132_s26 = ssub.s32 %s666_s21, %s726_s24  ;;  %p145_p0 = scmp.ne.s32.totalorder %s662_s20, %s658_s19 }
   0x6   : > { %p133_p1 = scmp.eq.s32.totalorder %s132_s26, 0  ;;  %p146_p2 = scmp.eq.s32.totalorder %s722_s22, 1 }
   0x7   : > { %p151_p3 = scmp.ne.s32.totalorder %s658_s19, %s654_s18  ;;  %p152_p4 = scmp.eq.s32.totalorder %s482_s23, 1 }
   0x8   : > { %s737_s27 = scalar_select %p133_p1, %s662_s20, %s135_s25  }
   0x9   : > { %p739_p5 = por %p146_p2, %p145_p0  ;;  %p743_p6 = por %p152_p4, %p151_p3 }
   0xa   : > { %p485_p7 = scmp.ge.s32.totalorder %s666_s21, 1  ;;  %p189_p8 = scmp.lt.s32.totalorder %s666_s21, 3 }
   0xc   : > { %p190_p9 = pnand %p485_p7, %p189_p8 }
   0xd   : > { %p216_p10 = scmp.lt.s32.totalorder (!%p190_p9), %s722_s22, 1  ;;  %s213_s26 = sand.u32 (!%p190_p9), 1, %s658_s19  }
   0xe   : > { %193 = sbr.rel (%p190_p9) target bundleno = 459 (0x1cb), region = 40  ;;  %s486_s30 = sshll.u32 (!%p190_p9), %s213_s26, 3 }
   0xf   : > { %s492_s8 = sshll.u32 (!%p190_p9), %s722_s22, 7  ;;  %s410_s14 = scalar_lea.sflag (!%p190_p9), [#allocation3], %s213_s26 }
  0x10   : > { %s848_s13 = scalar_lea.hbm (!%p190_p9), %s889_s5, %s492_s8 }
  0x13   : > { %v224_v0 = vld [vmem:[%s885_s1 + $0x18] sm:$0xff]  ;;  %v668_v1 = vmov 0.0   ;;  %v223_v2 = vld [vmem:[%s885_s1 + $0x10] sm:$0xff]  ;;  %vm669_vm0 = vmmov 0   ;;  %s217_s9 = scalar_select %p216_p10, %s722_s22, 1  ;;  %v222_v3 = vld [vmem:[%s885_s1 + $0x8] sm:$0xff] }
  0x14   : > { %517 = vmatprep.subr.mxu0 %v668_v1  ;;  %525 = vmatprep.mubr.msk.f32.mxu0 %vm669_vm0, %v668_v1  ;;  %v221_v4 = vld [vmem:[%s885_s1] sm:$0xff]  ;;  %vm232_vm1 = vcmask 261120   ;;  %v330_v6 = vld [vmem:[%s887_s3 + $0x78] sm:$0xff]  ;;  %v329_v7 = vld [vmem:[%s887_s3 + $0x70] sm:$0xff]  ;;  %s670_s22 = smov [#allocation2]  }
  0x15   : > { %518 = vmatpush3.msra.mxu0 %v224_v0  ;;  %528 = vmatprep.subr.mxu1 %v668_v1  ;;  %s487_s12 = sshll.u32 %s217_s9, 3  ;;  %v328_v8 = vld [vmem:[%s887_s3 + $0x68] sm:$0xff]  ;;  %v327_v9 = vld [vmem:[%s887_s3 + $0x60] sm:$0xff]  ;;  %v326_v10 = vld [vmem:[%s887_s3 + $0x58] sm:$0xff]  ;;  %s215_s9 = scalar_lea.vmem [#allocation2], %s486_s30 }
  0x16   : > { %519 = vmatprep.subr.mxu0 %v668_v1  ;;  %560 = vmatprep.mubr.msk.f32.mxu1 %vm669_vm0, %v668_v1  ;;  %s219_s17 = scalar_lea.vmem %s884_s0, %s487_s12  ;;  %v325_v11 = vld [vmem:[%s887_s3 + $0x50] sm:$0xff]  ;;  %v324_v12 = vld [vmem:[%s887_s3 + $0x48] sm:$0xff]  ;;  %v323_v13 = vld [vmem:[%s887_s3 + $0x40] sm:$0xff]  ;;  %s423_s10 = sshll.u32 %s215_s9, 4  ;;  %s424_s10 = int_to_ptr.vmem [resolvable:$true] %s423_s10 }
  0x17   : > { %520 = vmatpush3.msra.mxu0 %v223_v2  ;;  %v220_v5 = vld [vmem:[%s219_s17] sm:$0xff]  ;;  %529 = vmatpush3.msra.mxu1 %v330_v6  ;;  %v322_v14 = vld [vmem:[%s887_s3 + $0x38] sm:$0xff]  ;;  %v321_v15 = vld [vmem:[%s887_s3 + $0x30] sm:$0xff]  ;;  %s606_s15 = scalar_lea.vmem %s424_s10, 128  ;;  %s610_s16 = sshll.u32 %s670_s22, 4  ;;  %s611_s16 = int_to_ptr.vmem [resolvable:$false] %s610_s16 }
  0x18   : > { %521 = vmatprep.subr.mxu0 %v668_v1  ;;  %530 = vmatprep.subr.mxu1 %v668_v1  ;;  %v320_v16 = vld [vmem:[%s887_s3 + $0x28] sm:$0xff]  ;;  %v319_v17 = vld [vmem:[%s887_s3 + $0x20] sm:$0xff]  ;;  %v318_v18 = vld [vmem:[%s887_s3 + $0x18] sm:$0xff]  ;;  %p607_p11 = scmp.ne.s32.totalorder %s424_s10, %s606_s15  ;;  %s612_s17 = scalar_lea.vmem %s611_s16, 256 }
  0x19   : > { %522 = vmatpush3.msra.mxu0 %v222_v3  ;;  %531 = vmatpush3.msra.mxu1 %v329_v7  ;;  %v317_v19 = vld [vmem:[%s887_s3 + $0x10] sm:$0xff]  ;;  %v316_v20 = vld [vmem:[%s887_s3 + $0x8] sm:$0xff]  ;;  %v315_v21 = vld [vmem:[%s887_s3] sm:$0xff]  ;;  %p613_p0 = scmp.lt.s32.totalorder %s424_s10, %s611_s16  ;;  %p614_p1 = scmp.lt.s32.totalorder %s612_s17, %s606_s15 }
  0x1a   : > { %523 = vmatprep.subr.mxu0 %v668_v1  ;;  %532 = vmatprep.subr.mxu1 %v668_v1  ;;  %v488_v22 = vld [vmem:[%s886_s2] ss:$0 sm:$0xff]  ;;  %p608_p12 = pnand %p607_p11, %p739_p5 }
  0x1b   : > { %524 = vmatpush3.msra.mxu0 %v221_v4  ;;  %533 = vmatpush3.msra.mxu1 %v328_v8  ;;  %v490_v35 = vld [vmem:[%s888_s4] ss:$0 sm:$0xff]  ;;  %p615_p2 = por %p614_p1, %p613_p0 }
  0x1c   : > { %526 = vmatmul.mubr.msk.f32.vlgmr.msra.gmra.mxu0 %vm232_vm1, %v220_v5  ;;  %534 = vmatprep.subr.mxu1 %v668_v1  ;;  %p609_p13 = pneg %p608_p12 }
  0x1d   : > { %535 = vmatpush3.msra.mxu1 %v327_v9 }
  0x1e   : > { %536 = vmatprep.subr.mxu1 %v668_v1  ;;  %p616_p3 = pnand %p615_p2, %p609_p13 }
  0x1f   : > { %537 = vmatpush3.msra.mxu1 %v326_v10 }
  0x20   : > { %538 = vmatprep.subr.mxu1 %v668_v1 }
  0x21   : > { %539 = vmatpush3.msra.mxu1 %v325_v11 }
  0x22   : > { %540 = vmatprep.subr.mxu1 %v668_v1 }
  0x23   : > { %541 = vmatpush3.msra.mxu1 %v324_v12 }
  0x24   : > { %542 = vmatprep.subr.mxu1 %v668_v1 }
  0x25   : > { %543 = vmatpush3.msra.mxu1 %v323_v13 }
  0x26   : > { %544 = vmatprep.subr.mxu1 %v668_v1 }
  0x27   : > { %545 = vmatpush3.msra.mxu1 %v322_v14 }
  0x28   : > { %546 = vmatprep.subr.mxu1 %v668_v1 }
  0x29   : > { %547 = vmatpush3.msra.mxu1 %v321_v15 }
  0x2a   : > { %548 = vmatprep.subr.mxu1 %v668_v1 }
  0x2b   : > { %549 = vmatpush3.msra.mxu1 %v320_v16 }
  0x2c   : > { %550 = vmatprep.subr.mxu1 %v668_v1 }
  0x2d   : > { %551 = vmatpush3.msra.mxu1 %v319_v17 }
  0x2e   : > { %552 = vmatprep.subr.mxu1 %v668_v1 }
  0x2f   : > { %553 = vmatpush3.msra.mxu1 %v318_v18 }
  0x30   : > { %554 = vmatprep.subr.mxu1 %v668_v1 }
  0x31   : > { %555 = vmatpush3.msra.mxu1 %v317_v19 }
  0x32   : > { %556 = vmatprep.subr.mxu1 %v668_v1 }
  0x33   : > { %557 = vmatpush3.msra.mxu1 %v316_v20 }
  0x34   : > { %558 = vmatprep.subr.mxu1 %v668_v1 }
  0x35   : > { %559 = vmatpush3.msra.mxu1 %v315_v21 }
  0xdc   : > { %v302_v23 = vpop.f32.mrf.mxu0 }
  0xdd   : > { %v303_v24 = vadd.f32 %v488_v22, %v302_v23 }
  0xde   : > { %v527_v25 = vpop.f32.mrf.mxu0 }
  0xdf   : > { %v306_v26 = vmul.f32 %v303_v24, %v303_v24  ;;  %v310_v32 = vmul.f32 0.5, %v303_v24 }
  0xe1   : > { %v307_v27 = vmul.f32 0.044715, %v306_v26 }
  0xe3   : > { %v308_v28 = vadd.f32 1.0, %v307_v27 }
  0xe5   : > { %v309_v29 = vmul.f32 %v308_v28, %v303_v24 }
  0xe7   : > { %v311_v30 = vmul.f32 0.7978846, %v309_v29 }
  0xe9   : > { %604 = vtanh.f32 %v311_v30 }
  0xf6   : > { %v605_v31 = vpop.eup %604 }
  0xf7   : > { %v313_v33 = vadd.f32 1.0, %v605_v31 }
  0xf9   : > { %v314_v34 = vmul.f32 %v313_v33, %v310_v32 }
  0xfb   : > { %561 = vmatmul.mubr.f32.vlgmr.msra.gmra.mxu1 %v314_v34 }
 0x1bb   : > { %v404_v36 = vpop.f32.mrf.mxu1 }
 0x1bc   : > { %v405_v37 = vadd.f32 %v490_v35, %v404_v36 }
 0x1bd   : > { %v562_v38 = vpop.f32.mrf.mxu1 }
 0x1be   : > { %408 = vst.msk [vmem:[%s215_s9] sm:$0xff] %vm232_vm1, %v405_v37 }
 0x1bf   : > { %619 = shalt.err (!%p616_p3)
}
 0x1c0   : > { %s620_s23 = scalar_lea.hbm %s848_s13, 128  ;;  %s624_s30 = scalar_lea.hbm %s889_s5, 256 }
 0x1c1   : > { %p621_p4 = scmp.ne.s32.totalorder %s848_s13, %s620_s23  ;;  %p625_p9 = scmp.lt.s32.totalorder %s848_s13, %s889_s5 }
 0x1c2   : > { %p626_p10 = scmp.lt.s32.totalorder %s624_s30, %s620_s23 }
 0x1c3   : > { %p622_p7 = pnand %p621_p4, %p739_p5 }
 0x1c4   : > { %p627_p11 = por %p626_p10, %p625_p9 }
 0x1c5   : > { %p623_p8 = pneg %p622_p7 }
 0x1c7   : > { %p628_p12 = pnand %p627_p11, %p623_p8 }
 0x1c9   : > { %631 = shalt.err (!%p628_p12)
}
 0x1ca   : > { %563 = dma.vmem_to_hbm [thread:$0]  (%p739_p5), %s424_s10, 128, %s848_s13, %s410_s14  }
 0x1cb PF: > { %p569_p13 = scmp.ge.s32.totalorder %s666_s21, 2  ;;  %s435_s8 = sand.u32 1, %s654_s18  }
 0x1cc   : > { %s436_s9 = scalar_lea.sflag [#allocation3], %s435_s8 }
 0x1cd   : > { %p566_p0 = pnand %p569_p13, %p743_p6 }
 0x1cf   : > { %p567_p1 = pneg %p566_p0 }
 0x1d1   : > { %649 = dma.done.wait (%p567_p1), %s436_s9, 128  }
 0x1d2   : > { %651 = vsyncadd (%p567_p1), %s436_s9, 4294967168  ;;  %p15_p2 = scmp.ge.s32.totalorder %s726_s24, 4   ;;  %s892_s18 = smov %s658_s19 }
 0x1d3   : > { %s893_s19 = smov %s662_s20  ;;  %s894_s20 = smov %s737_s27 }
 0x1d4   : > { %s895_s21 = smov %s726_s24  ;;  %17 = sbr.rel (!%p15_p2) target bundleno = 3 (0x3), region = 75 }
 0x1d9   :  { %441 = vsyncpa [#allocation3], 1 }
 0x1da   :  { %443 = vsyncpa [#allocation3 + $0x1], 1 }

</bundles_post_ra>
